<compile_context>
chip_gen: v5e
topology: v5e:2x2
jax: 0.10.0
libtpu: 0.0.40
codegen_flags: <defaults>
</compile_context>

<pallas_src>
import functools

import jax
import jax.numpy as jnp
from jax import lax
from jax.experimental import pallas as pl
from jax.experimental.pallas import tpu as pltpu


def _dot_t(a, w):
    """a @ w.T without materializing the transpose (contract last dims).

    Weights stay in their stored dtype; MXU accumulates in f32."""
    return lax.dot_general(
        a, w, (((1,), (1,)), ((), ())), preferred_element_type=jnp.float32
    )


def _layernorm(x, gamma, beta, eps=1e-5):
    mu = jnp.mean(x, axis=-1, keepdims=True)
    xc = x - mu
    var = jnp.mean(xc * xc, axis=-1, keepdims=True)
    return xc * lax.rsqrt(var + eps) * gamma + beta


def _transformer_block_kernel(
    x_ref,        # (B, L, E)  block of batch elements (batch-first)
    w_in_ref,     # (3E, E)    in_proj_weight
    b_in_ref,     # (1, 3E)
    w_out_ref,    # (E, E)     out_proj.weight
    b_out_ref,    # (1, E)
    w1_ref,       # (E, E)     ffn linear1 weight
    b1_ref,       # (1, E)
    w2_ref,       # (E, E)     ffn linear2 weight
    b2_ref,       # (1, E)
    g1_ref,       # (1, E)     norm1 gamma
    be1_ref,      # (1, E)     norm1 beta
    g2_ref,       # (1, E)     norm2 gamma
    be2_ref,      # (1, E)     norm2 beta
    y_ref,        # (B, L, E)  output
    attn_ref,     # scratch VMEM (B, L, E) f32 — per-head outputs land here
    *,
    num_heads,
):
    B, L, E = x_ref.shape
    rows = B * L
    Dh = E // num_heads
    scale = 1.0 / float(Dh) ** 0.5

    # Elementwise math stays f32 (v5e has no bf16 VPU/EUP); MXU operands
    # (weights) keep their stored dtype.
    x = x_ref[...].astype(jnp.float32)          # (B, L, E)
    x2 = x.reshape(rows, E)                     # row-batched view (no copy)

    # ---- QKV projection: one (rows, E) x (E, 3E) matmul --------------------
    qkv = _dot_t(x2, w_in_ref[...]) + b_in_ref[...]          # (rows, 3E)
    qkv = qkv.reshape(B, L, 3 * E)

    # ---- attention: heads looped (H is small), batched over B per head -----
    # Scaling q (B,L,Dh) is cheaper than scaling the (B,L,L) score tensor.
    for h in range(num_heads):
        q_h = qkv[:, :, h * Dh:(h + 1) * Dh] * scale                  # (B,L,Dh)
        k_h = qkv[:, :, E + h * Dh:E + (h + 1) * Dh]                  # (B,L,Dh)
        v_h = qkv[:, :, 2 * E + h * Dh:2 * E + (h + 1) * Dh]          # (B,L,Dh)

        s = jnp.einsum("bld,bmd->blm", q_h, k_h,
                       preferred_element_type=jnp.float32)            # (B,L,L)
        s = s - jnp.max(s, axis=-1, keepdims=True)
        p = jnp.exp(s)
        denom = jnp.sum(p, axis=-1, keepdims=True)
        # EUP approximate reciprocal + one Newton step (≈ f32 exact, no divide)
        r = pl.reciprocal(denom, approx=True)
        r = r * (2.0 - denom * r)
        p = p * r

        o_h = jnp.einsum("blm,bmd->bld", p, v_h,
                         preferred_element_type=jnp.float32)          # (B,L,Dh)
        attn_ref[:, :, h * Dh:(h + 1) * Dh] = o_h

    # ---- single full-K output projection on all rows ------------------------
    attn_out = _dot_t(attn_ref[...].reshape(rows, E), w_out_ref[...]) + b_out_ref[...]

    # ---- residual + norm1 ----------------------------------------------------
    h1 = _layernorm(x2 + attn_out, g1_ref[...], be1_ref[...])

    # ---- FFN: Linear -> ReLU -> (Dropout=id) -> Linear -----------------------
    f = jnp.maximum(_dot_t(h1, w1_ref[...]) + b1_ref[...], 0.0)
    f = _dot_t(f, w2_ref[...]) + b2_ref[...]

    # ---- residual + norm2 ----------------------------------------------------
    out = _layernorm(h1 + f, g2_ref[...], be2_ref[...])
    y_ref[...] = out.reshape(B, L, E).astype(y_ref.dtype)


def _pick_batch_block(n_batch, seq_len, rows_target=256):
    """Batch elements per grid step.

    Aim for B*L ≈ rows_target rows (full M tile for the 2x256x256 MXUs on
    v6e/v7x; v5e's 4x128x128 already saturates at 128), while preferring
    >= 2 grid steps when splitting costs little, so both v7x TensorCores
    get work under dimension_semantics=('parallel',)."""
    b = max(1, min(n_batch, max(1, rows_target // max(seq_len, 1))))
    while n_batch % b:
        b -= 1
    if n_batch // b < 2 and n_batch >= 2 and b * seq_len <= rows_target:
        b2 = b // 2
        while b2 >= 1 and n_batch % b2:
            b2 -= 1
        if b2 >= 1:
            b = b2
    return b


def transformer_block(x, params, num_heads, batch_first=False, rows_target=256):
    """SASRec TransformerBlock forward.

    batch_first=False: x is (L, N, E) — PyTorch nn.MultiheadAttention layout.
    batch_first=True:  x is (N, L, E) — no boundary transposes (no extra HBM
                       round-trips); preferred when activations are already
                       batch-first (as in SASRec)."""
    if not batch_first:
        x = jnp.transpose(x, (1, 0, 2))     # (L, N, E) -> (N, L, E)
    N, L, E = x.shape
    assert E % num_heads == 0
    B = _pick_batch_block(N, L, rows_target)
    grid = (N // B,)

    full = lambda shape: pl.BlockSpec(shape, lambda n: (0, 0))
    in_specs = [
        pl.BlockSpec((B, L, E), lambda n: (n, 0, 0)),   # x  (batch block)
        full((3 * E, E)), full((1, 3 * E)),             # w_in, b_in
        full((E, E)), full((1, E)),                     # w_out, b_out
        full((E, E)), full((1, E)),                     # w1, b1
        full((E, E)), full((1, E)),                     # w2, b2
        full((1, E)), full((1, E)),                     # gamma1, beta1
        full((1, E)), full((1, E)),                     # gamma2, beta2
    ]

    # Advisory cost estimate so XLA can schedule neighbours around the call.
    H = num_heads
    flops = int(N * L * 12 * E * E + 4 * N * L * L * E)
    transcendentals = int(N * H * L * L + 2 * N * L + N * H * L)
    param_bytes = sum(int(v.size) * v.dtype.itemsize for v in params.values())
    bytes_accessed = int(2 * x.size * x.dtype.itemsize + param_bytes)

    y = pl.pallas_call(
        functools.partial(_transformer_block_kernel, num_heads=num_heads),
        out_shape=jax.ShapeDtypeStruct((N, L, E), x.dtype),
        grid_spec=pltpu.PrefetchScalarGridSpec(
            num_scalar_prefetch=0,
            grid=grid,
            in_specs=in_specs,
            out_specs=pl.BlockSpec((B, L, E), lambda n: (n, 0, 0)),
            scratch_shapes=[pltpu.VMEM((B, L, E), jnp.float32)],
        ),
        compiler_params=pltpu.CompilerParams(
            dimension_semantics=("parallel",),
        ),
        cost_estimate=pl.CostEstimate(
            flops=flops,
            transcendentals=transcendentals,
            bytes_accessed=bytes_accessed,
        ),
    )(
        x,
        params["w_in"], params["b_in"],
        params["w_out"], params["b_out"],
        params["w1"], params["b1"],
        params["w2"], params["b2"],
        params["g1"], params["be1"],
        params["g2"], params["be2"],
    )
    if not batch_first:
        y = jnp.transpose(y, (1, 0, 2))     # back to (L, N, E)
    return y


def _reference(x, params, num_heads):
    """Pure-JAX reference replicating PyTorch semantics (eval mode). x: (L,N,E)."""
    L, N, E = x.shape
    Dh = E // num_heads
    scale = 1.0 / (float(Dh) ** 0.5)
    xf = x.astype(jnp.float32)

    qkv = jnp.einsum("lne,fe->lnf", xf, params["w_in"]) + params["b_in"][0]
    q, k, v = jnp.split(qkv, 3, axis=-1)          # each (L, N, E)

    def split_heads(t):  # -> (N, H, L, Dh)
        return jnp.transpose(t.reshape(L, N, num_heads, Dh), (1, 2, 0, 3))

    q, k, v = split_heads(q) * scale, split_heads(k), split_heads(v)
    s = jnp.einsum("nhld,nhmd->nhlm", q, k)
    p = jax.nn.softmax(s, axis=-1)
    o = jnp.einsum("nhlm,nhmd->nhld", p, v)       # (N, H, L, Dh)
    o = jnp.transpose(o, (2, 0, 1, 3)).reshape(L, N, E)
    attn = jnp.einsum("lne,fe->lnf", o, params["w_out"]) + params["b_out"][0]

    def ln(t, g, b, eps=1e-5):
        mu = jnp.mean(t, -1, keepdims=True)
        var = jnp.mean((t - mu) ** 2, -1, keepdims=True)
        return (t - mu) * lax.rsqrt(var + eps) * g[0] + b[0]

    h1 = ln(xf + attn, params["g1"], params["be1"])
    f = jnp.maximum(jnp.einsum("lne,fe->lnf", h1, params["w1"]) + params["b1"][0], 0.0)
    f = jnp.einsum("lne,fe->lnf", f, params["w2"]) + params["b2"][0]
    return ln(h1 + f, params["g2"], params["be2"]).astype(x.dtype)


def init_params(key, hidden_size):
    E = hidden_size
    ks = jax.random.split(key, 6)
    s = 0.05
    return {
        "w_in":  jax.random.normal(ks[0], (3 * E, E), jnp.float32) * s,
        "b_in":  jnp.zeros((1, 3 * E), jnp.float32),
        "w_out": jax.random.normal(ks[1], (E, E), jnp.float32) * s,
        "b_out": jnp.zeros((1, E), jnp.float32),
        "w1":    jax.random.normal(ks[2], (E, E), jnp.float32) * s,
        "b1":    jax.random.normal(ks[3], (1, E), jnp.float32) * s,
        "w2":    jax.random.normal(ks[4], (E, E), jnp.float32) * s,
        "b2":    jax.random.normal(ks[5], (1, E), jnp.float32) * s,
        "g1":    jnp.ones((1, E), jnp.float32),
        "be1":   jnp.zeros((1, E), jnp.float32),
        "g2":    jnp.ones((1, E), jnp.float32),
        "be2":   jnp.zeros((1, E), jnp.float32),
    }


if __name__ == "__main__":
    L, N, E, H = 8, 4, 32, 4     # seq, batch, hidden, heads
    key = jax.random.PRNGKey(0)
    kx, kp = jax.random.split(key)
    x = jax.random.normal(kx, (L, N, E), jnp.float32)   # PyTorch (seq, batch, embed)
    params = init_params(kp, E)

    # PyTorch-layout path (boundary transposes)
    y = jax.block_until_ready(transformer_block(x, params, num_heads=H))
    y_ref = jax.block_until_ready(_reference(x, params, num_heads=H))
    assert y.shape == (L, N, E)
    assert jnp.allclose(y, y_ref, rtol=1e-4, atol=1e-4), "mismatch vs reference"

    # batch-first path (zero wrapper transposes) must agree too
    xb = jnp.transpose(x, (1, 0, 2))
    yb = jax.block_until_ready(
        transformer_block(xb, params, num_heads=H, batch_first=True))
    assert jnp.allclose(jnp.transpose(yb, (1, 0, 2)), y_ref, rtol=1e-4, atol=1e-4), \
        "batch_first path mismatch"

    print("KERNEL_OK")
</pallas_src>

<mosaic_0001>
module attributes {stable_mosaic.version = 11 : i64} {
  func.func @_transformer_block_kernel(%arg0: i32, %arg1: memref<2x8x32xf32, #tpu.memory_space<vmem>>, %arg2: memref<96x32xf32, #tpu.memory_space<vmem>>, %arg3: memref<1x96xf32, #tpu.memory_space<vmem>>, %arg4: memref<32x32xf32, #tpu.memory_space<vmem>>, %arg5: memref<1x32xf32, #tpu.memory_space<vmem>>, %arg6: memref<32x32xf32, #tpu.memory_space<vmem>>, %arg7: memref<1x32xf32, #tpu.memory_space<vmem>>, %arg8: memref<32x32xf32, #tpu.memory_space<vmem>>, %arg9: memref<1x32xf32, #tpu.memory_space<vmem>>, %arg10: memref<1x32xf32, #tpu.memory_space<vmem>>, %arg11: memref<1x32xf32, #tpu.memory_space<vmem>>, %arg12: memref<1x32xf32, #tpu.memory_space<vmem>>, %arg13: memref<1x32xf32, #tpu.memory_space<vmem>>, %arg14: memref<2x8x32xf32, #tpu.memory_space<vmem>>, %arg15: memref<2x8x32xf32, #tpu.memory_space<vmem>>) attributes {dimension_semantics = [#tpu.dimension_semantics<parallel>], iteration_bounds = array<i64: 2>, scalar_prefetch = 0 : i64, scratch_operands = 1 : i64, tpu.core_type = #tpu.core_type<tc>, window_params = [{transform_indices = @transform_0, window_bounds = array<i64: 2, 8, 32>}, {pipeline_mode = #tpu.pipeline_mode<synchronous>, transform_indices = @transform_1, window_bounds = array<i64: 96, 32>}, {pipeline_mode = #tpu.pipeline_mode<synchronous>, transform_indices = @transform_2, window_bounds = array<i64: 1, 96>}, {pipeline_mode = #tpu.pipeline_mode<synchronous>, transform_indices = @transform_3, window_bounds = array<i64: 32, 32>}, {pipeline_mode = #tpu.pipeline_mode<synchronous>, transform_indices = @transform_4, window_bounds = array<i64: 1, 32>}, {pipeline_mode = #tpu.pipeline_mode<synchronous>, transform_indices = @transform_5, window_bounds = array<i64: 32, 32>}, {pipeline_mode = #tpu.pipeline_mode<synchronous>, transform_indices = @transform_6, window_bounds = array<i64: 1, 32>}, {pipeline_mode = #tpu.pipeline_mode<synchronous>, transform_indices = @transform_7, window_bounds = array<i64: 32, 32>}, {pipeline_mode = #tpu.pipeline_mode<synchronous>, transform_indices = @transform_8, window_bounds = array<i64: 1, 32>}, {pipeline_mode = #tpu.pipeline_mode<synchronous>, transform_indices = @transform_9, window_bounds = array<i64: 1, 32>}, {pipeline_mode = #tpu.pipeline_mode<synchronous>, transform_indices = @transform_10, window_bounds = array<i64: 1, 32>}, {pipeline_mode = #tpu.pipeline_mode<synchronous>, transform_indices = @transform_11, window_bounds = array<i64: 1, 32>}, {pipeline_mode = #tpu.pipeline_mode<synchronous>, transform_indices = @transform_12, window_bounds = array<i64: 1, 32>}, {transform_indices = @transform_13, window_bounds = array<i64: 2, 8, 32>}]} {
    %c0 = arith.constant 0 : index
    %c0_0 = arith.constant 0 : index
    %c0_1 = arith.constant 0 : index
    %0 = vector.load %arg1[%c0, %c0_0, %c0_1] : memref<2x8x32xf32, #tpu.memory_space<vmem>>, vector<2x8x32xf32>
    %1 = vector.shape_cast %0 : vector<2x8x32xf32> to vector<16x32xf32>
    %c0_2 = arith.constant 0 : index
    %c0_3 = arith.constant 0 : index
    %2 = vector.load %arg2[%c0_2, %c0_3] : memref<96x32xf32, #tpu.memory_space<vmem>>, vector<96x32xf32>
    %cst = arith.constant dense<0.000000e+00> : vector<16x96xf32>
    %3 = tpu.matmul %1, %2, %cst {dimension_numbers = #tpu.dot_dimension_numbers<[1], [1], [0], [0], [0, 0, 1, 0], [], []>} : vector<16x32xf32>, vector<96x32xf32>, vector<16x96xf32> -> vector<16x96xf32>
    %c0_4 = arith.constant 0 : index
    %c0_5 = arith.constant 0 : index
    %4 = vector.load %arg3[%c0_4, %c0_5] : memref<1x96xf32, #tpu.memory_space<vmem>>, vector<1x96xf32>
    %5 = vector.broadcast %4 : vector<1x96xf32> to vector<16x96xf32>
    %6 = arith.addf %3, %5 : vector<16x96xf32>
    %7 = vector.shape_cast %6 : vector<16x96xf32> to vector<2x8x96xf32>
    %8 = vector.extract_strided_slice %7 {offsets = [0, 0, 0], sizes = [2, 8, 8], strides = [1, 1, 1]} : vector<2x8x96xf32> to vector<2x8x8xf32>
    %cst_6 = arith.constant 0.353553385 : f32
    %9 = vector.broadcast %cst_6 : f32 to vector<2x8x8xf32>
    %10 = arith.mulf %8, %9 : vector<2x8x8xf32>
    %11 = vector.extract_strided_slice %7 {offsets = [0, 0, 32], sizes = [2, 8, 8], strides = [1, 1, 1]} : vector<2x8x96xf32> to vector<2x8x8xf32>
    %12 = vector.extract_strided_slice %7 {offsets = [0, 0, 64], sizes = [2, 8, 8], strides = [1, 1, 1]} : vector<2x8x96xf32> to vector<2x8x8xf32>
    "tpu.trace_start"() <{level = 10 : i32, message = "bld,bmd->blm"}> : () -> ()
    %cst_7 = arith.constant dense<0.000000e+00> : vector<2x8x8xf32>
    %13 = tpu.matmul %10, %11, %cst_7 {dimension_numbers = #tpu.dot_dimension_numbers<[2], [2], [1], [1], [0, 0, 0, 1, 1, 1], [0], [0]>} : vector<2x8x8xf32>, vector<2x8x8xf32>, vector<2x8x8xf32> -> vector<2x8x8xf32>
    "tpu.trace_stop"() : () -> ()
    %cst_8 = arith.constant dense<0xFF800000> : vector<2x8xf32>
    %14 = vector.multi_reduction <maximumf>, %13, %cst_8 [2] : vector<2x8x8xf32> to vector<2x8xf32>
    %15 = vector.shape_cast %14 : vector<2x8xf32> to vector<2x8x1xf32>
    %16 = vector.broadcast %15 : vector<2x8x1xf32> to vector<2x8x8xf32>
    %17 = arith.subf %13, %16 : vector<2x8x8xf32>
    %18 = math.exp %17 : vector<2x8x8xf32>
    %cst_9 = arith.constant dense<0.000000e+00> : vector<2x8xf32>
    %19 = vector.multi_reduction <add>, %18, %cst_9 [2] : vector<2x8x8xf32> to vector<2x8xf32>
    %20 = vector.shape_cast %19 : vector<2x8xf32> to vector<2x8x1xf32>
    %21 = tpu.reciprocal %20 {approx = true} : vector<2x8x1xf32> -> vector<2x8x1xf32>
    %22 = arith.mulf %20, %21 : vector<2x8x1xf32>
    %cst_10 = arith.constant 2.000000e+00 : f32
    %23 = vector.broadcast %cst_10 : f32 to vector<2x8x1xf32>
    %24 = arith.subf %23, %22 : vector<2x8x1xf32>
    %25 = arith.mulf %21, %24 : vector<2x8x1xf32>
    %26 = vector.broadcast %25 : vector<2x8x1xf32> to vector<2x8x8xf32>
    %27 = arith.mulf %18, %26 : vector<2x8x8xf32>
    "tpu.trace_start"() <{level = 10 : i32, message = "blm,bmd->bld"}> : () -> ()
    %cst_11 = arith.constant dense<0.000000e+00> : vector<2x8x8xf32>
    %28 = tpu.matmul %27, %12, %cst_11 {dimension_numbers = #tpu.dot_dimension_numbers<[2], [1], [1], [2], [0, 0, 0, 1, 1, 2], [0], [0]>} : vector<2x8x8xf32>, vector<2x8x8xf32>, vector<2x8x8xf32> -> vector<2x8x8xf32>
    "tpu.trace_stop"() : () -> ()
    %c0_12 = arith.constant 0 : index
    %c0_13 = arith.constant 0 : index
    %c0_14 = arith.constant 0 : index
    %29 = vector.load %arg15[%c0_12, %c0_13, %c0_14] : memref<2x8x32xf32, #tpu.memory_space<vmem>>, vector<2x8x8xf32>
    tpu.vector_store %arg15[%c0_12, %c0_13, %c0_14], %28 {strides = array<i32>} : memref<2x8x32xf32, #tpu.memory_space<vmem>>, vector<2x8x8xf32>,
    %30 = vector.extract_strided_slice %7 {offsets = [0, 0, 8], sizes = [2, 8, 8], strides = [1, 1, 1]} : vector<2x8x96xf32> to vector<2x8x8xf32>
    %cst_15 = arith.constant 0.353553385 : f32
    %31 = vector.broadcast %cst_15 : f32 to vector<2x8x8xf32>
    %32 = arith.mulf %30, %31 : vector<2x8x8xf32>
    %33 = vector.extract_strided_slice %7 {offsets = [0, 0, 40], sizes = [2, 8, 8], strides = [1, 1, 1]} : vector<2x8x96xf32> to vector<2x8x8xf32>
    %34 = vector.extract_strided_slice %7 {offsets = [0, 0, 72], sizes = [2, 8, 8], strides = [1, 1, 1]} : vector<2x8x96xf32> to vector<2x8x8xf32>
    "tpu.trace_start"() <{level = 10 : i32, message = "bld,bmd->blm"}> : () -> ()
    %cst_16 = arith.constant dense<0.000000e+00> : vector<2x8x8xf32>
    %35 = tpu.matmul %32, %33, %cst_16 {dimension_numbers = #tpu.dot_dimension_numbers<[2], [2], [1], [1], [0, 0, 0, 1, 1, 1], [0], [0]>} : vector<2x8x8xf32>, vector<2x8x8xf32>, vector<2x8x8xf32> -> vector<2x8x8xf32>
    "tpu.trace_stop"() : () -> ()
    %cst_17 = arith.constant dense<0xFF800000> : vector<2x8xf32>
    %36 = vector.multi_reduction <maximumf>, %35, %cst_17 [2] : vector<2x8x8xf32> to vector<2x8xf32>
    %37 = vector.shape_cast %36 : vector<2x8xf32> to vector<2x8x1xf32>
    %38 = vector.broadcast %37 : vector<2x8x1xf32> to vector<2x8x8xf32>
    %39 = arith.subf %35, %38 : vector<2x8x8xf32>
    %40 = math.exp %39 : vector<2x8x8xf32>
    %cst_18 = arith.constant dense<0.000000e+00> : vector<2x8xf32>
    %41 = vector.multi_reduction <add>, %40, %cst_18 [2] : vector<2x8x8xf32> to vector<2x8xf32>
    %42 = vector.shape_cast %41 : vector<2x8xf32> to vector<2x8x1xf32>
    %43 = tpu.reciprocal %42 {approx = true} : vector<2x8x1xf32> -> vector<2x8x1xf32>
    %44 = arith.mulf %42, %43 : vector<2x8x1xf32>
    %cst_19 = arith.constant 2.000000e+00 : f32
    %45 = vector.broadcast %cst_19 : f32 to vector<2x8x1xf32>
    %46 = arith.subf %45, %44 : vector<2x8x1xf32>
    %47 = arith.mulf %43, %46 : vector<2x8x1xf32>
    %48 = vector.broadcast %47 : vector<2x8x1xf32> to vector<2x8x8xf32>
    %49 = arith.mulf %40, %48 : vector<2x8x8xf32>
    "tpu.trace_start"() <{level = 10 : i32, message = "blm,bmd->bld"}> : () -> ()
    %cst_20 = arith.constant dense<0.000000e+00> : vector<2x8x8xf32>
    %50 = tpu.matmul %49, %34, %cst_20 {dimension_numbers = #tpu.dot_dimension_numbers<[2], [1], [1], [2], [0, 0, 0, 1, 1, 2], [0], [0]>} : vector<2x8x8xf32>, vector<2x8x8xf32>, vector<2x8x8xf32> -> vector<2x8x8xf32>
    "tpu.trace_stop"() : () -> ()
    %c0_21 = arith.constant 0 : index
    %c0_22 = arith.constant 0 : index
    %c8 = arith.constant 8 : index
    %51 = vector.load %arg15[%c0_21, %c0_22, %c8] : memref<2x8x32xf32, #tpu.memory_space<vmem>>, vector<2x8x8xf32>
    tpu.vector_store %arg15[%c0_21, %c0_22, %c8], %50 {strides = array<i32>} : memref<2x8x32xf32, #tpu.memory_space<vmem>>, vector<2x8x8xf32>,
    %52 = vector.extract_strided_slice %7 {offsets = [0, 0, 16], sizes = [2, 8, 8], strides = [1, 1, 1]} : vector<2x8x96xf32> to vector<2x8x8xf32>
    %cst_23 = arith.constant 0.353553385 : f32
    %53 = vector.broadcast %cst_23 : f32 to vector<2x8x8xf32>
    %54 = arith.mulf %52, %53 : vector<2x8x8xf32>
    %55 = vector.extract_strided_slice %7 {offsets = [0, 0, 48], sizes = [2, 8, 8], strides = [1, 1, 1]} : vector<2x8x96xf32> to vector<2x8x8xf32>
    %56 = vector.extract_strided_slice %7 {offsets = [0, 0, 80], sizes = [2, 8, 8], strides = [1, 1, 1]} : vector<2x8x96xf32> to vector<2x8x8xf32>
    "tpu.trace_start"() <{level = 10 : i32, message = "bld,bmd->blm"}> : () -> ()
    %cst_24 = arith.constant dense<0.000000e+00> : vector<2x8x8xf32>
    %57 = tpu.matmul %54, %55, %cst_24 {dimension_numbers = #tpu.dot_dimension_numbers<[2], [2], [1], [1], [0, 0, 0, 1, 1, 1], [0], [0]>} : vector<2x8x8xf32>, vector<2x8x8xf32>, vector<2x8x8xf32> -> vector<2x8x8xf32>
    "tpu.trace_stop"() : () -> ()
    %cst_25 = arith.constant dense<0xFF800000> : vector<2x8xf32>
    %58 = vector.multi_reduction <maximumf>, %57, %cst_25 [2] : vector<2x8x8xf32> to vector<2x8xf32>
    %59 = vector.shape_cast %58 : vector<2x8xf32> to vector<2x8x1xf32>
    %60 = vector.broadcast %59 : vector<2x8x1xf32> to vector<2x8x8xf32>
    %61 = arith.subf %57, %60 : vector<2x8x8xf32>
    %62 = math.exp %61 : vector<2x8x8xf32>
    %cst_26 = arith.constant dense<0.000000e+00> : vector<2x8xf32>
    %63 = vector.multi_reduction <add>, %62, %cst_26 [2] : vector<2x8x8xf32> to vector<2x8xf32>
    %64 = vector.shape_cast %63 : vector<2x8xf32> to vector<2x8x1xf32>
    %65 = tpu.reciprocal %64 {approx = true} : vector<2x8x1xf32> -> vector<2x8x1xf32>
    %66 = arith.mulf %64, %65 : vector<2x8x1xf32>
    %cst_27 = arith.constant 2.000000e+00 : f32
    %67 = vector.broadcast %cst_27 : f32 to vector<2x8x1xf32>
    %68 = arith.subf %67, %66 : vector<2x8x1xf32>
    %69 = arith.mulf %65, %68 : vector<2x8x1xf32>
    %70 = vector.broadcast %69 : vector<2x8x1xf32> to vector<2x8x8xf32>
    %71 = arith.mulf %62, %70 : vector<2x8x8xf32>
    "tpu.trace_start"() <{level = 10 : i32, message = "blm,bmd->bld"}> : () -> ()
    %cst_28 = arith.constant dense<0.000000e+00> : vector<2x8x8xf32>
    %72 = tpu.matmul %71, %56, %cst_28 {dimension_numbers = #tpu.dot_dimension_numbers<[2], [1], [1], [2], [0, 0, 0, 1, 1, 2], [0], [0]>} : vector<2x8x8xf32>, vector<2x8x8xf32>, vector<2x8x8xf32> -> vector<2x8x8xf32>
    "tpu.trace_stop"() : () -> ()
    %c0_29 = arith.constant 0 : index
    %c0_30 = arith.constant 0 : index
    %c16 = arith.constant 16 : index
    %73 = vector.load %arg15[%c0_29, %c0_30, %c16] : memref<2x8x32xf32, #tpu.memory_space<vmem>>, vector<2x8x8xf32>
    tpu.vector_store %arg15[%c0_29, %c0_30, %c16], %72 {strides = array<i32>} : memref<2x8x32xf32, #tpu.memory_space<vmem>>, vector<2x8x8xf32>,
    %74 = vector.extract_strided_slice %7 {offsets = [0, 0, 24], sizes = [2, 8, 8], strides = [1, 1, 1]} : vector<2x8x96xf32> to vector<2x8x8xf32>
    %cst_31 = arith.constant 0.353553385 : f32
    %75 = vector.broadcast %cst_31 : f32 to vector<2x8x8xf32>
    %76 = arith.mulf %74, %75 : vector<2x8x8xf32>
    %77 = vector.extract_strided_slice %7 {offsets = [0, 0, 56], sizes = [2, 8, 8], strides = [1, 1, 1]} : vector<2x8x96xf32> to vector<2x8x8xf32>
    %78 = vector.extract_strided_slice %7 {offsets = [0, 0, 88], sizes = [2, 8, 8], strides = [1, 1, 1]} : vector<2x8x96xf32> to vector<2x8x8xf32>
    "tpu.trace_start"() <{level = 10 : i32, message = "bld,bmd->blm"}> : () -> ()
    %cst_32 = arith.constant dense<0.000000e+00> : vector<2x8x8xf32>
    %79 = tpu.matmul %76, %77, %cst_32 {dimension_numbers = #tpu.dot_dimension_numbers<[2], [2], [1], [1], [0, 0, 0, 1, 1, 1], [0], [0]>} : vector<2x8x8xf32>, vector<2x8x8xf32>, vector<2x8x8xf32> -> vector<2x8x8xf32>
    "tpu.trace_stop"() : () -> ()
    %cst_33 = arith.constant dense<0xFF800000> : vector<2x8xf32>
    %80 = vector.multi_reduction <maximumf>, %79, %cst_33 [2] : vector<2x8x8xf32> to vector<2x8xf32>
    %81 = vector.shape_cast %80 : vector<2x8xf32> to vector<2x8x1xf32>
    %82 = vector.broadcast %81 : vector<2x8x1xf32> to vector<2x8x8xf32>
    %83 = arith.subf %79, %82 : vector<2x8x8xf32>
    %84 = math.exp %83 : vector<2x8x8xf32>
    %cst_34 = arith.constant dense<0.000000e+00> : vector<2x8xf32>
    %85 = vector.multi_reduction <add>, %84, %cst_34 [2] : vector<2x8x8xf32> to vector<2x8xf32>
    %86 = vector.shape_cast %85 : vector<2x8xf32> to vector<2x8x1xf32>
    %87 = tpu.reciprocal %86 {approx = true} : vector<2x8x1xf32> -> vector<2x8x1xf32>
    %88 = arith.mulf %86, %87 : vector<2x8x1xf32>
    %cst_35 = arith.constant 2.000000e+00 : f32
    %89 = vector.broadcast %cst_35 : f32 to vector<2x8x1xf32>
    %90 = arith.subf %89, %88 : vector<2x8x1xf32>
    %91 = arith.mulf %87, %90 : vector<2x8x1xf32>
    %92 = vector.broadcast %91 : vector<2x8x1xf32> to vector<2x8x8xf32>
    %93 = arith.mulf %84, %92 : vector<2x8x8xf32>
    "tpu.trace_start"() <{level = 10 : i32, message = "blm,bmd->bld"}> : () -> ()
    %cst_36 = arith.constant dense<0.000000e+00> : vector<2x8x8xf32>
    %94 = tpu.matmul %93, %78, %cst_36 {dimension_numbers = #tpu.dot_dimension_numbers<[2], [1], [1], [2], [0, 0, 0, 1, 1, 2], [0], [0]>} : vector<2x8x8xf32>, vector<2x8x8xf32>, vector<2x8x8xf32> -> vector<2x8x8xf32>
    "tpu.trace_stop"() : () -> ()
    %c0_37 = arith.constant 0 : index
    %c0_38 = arith.constant 0 : index
    %c24 = arith.constant 24 : index
    %95 = vector.load %arg15[%c0_37, %c0_38, %c24] : memref<2x8x32xf32, #tpu.memory_space<vmem>>, vector<2x8x8xf32>
    tpu.vector_store %arg15[%c0_37, %c0_38, %c24], %94 {strides = array<i32>} : memref<2x8x32xf32, #tpu.memory_space<vmem>>, vector<2x8x8xf32>,
    %c0_39 = arith.constant 0 : index
    %c0_40 = arith.constant 0 : index
    %c0_41 = arith.constant 0 : index
    %96 = vector.load %arg15[%c0_39, %c0_40, %c0_41] : memref<2x8x32xf32, #tpu.memory_space<vmem>>, vector<2x8x32xf32>
    %97 = vector.shape_cast %96 : vector<2x8x32xf32> to vector<16x32xf32>
    %c0_42 = arith.constant 0 : index
    %c0_43 = arith.constant 0 : index
    %98 = vector.load %arg4[%c0_42, %c0_43] : memref<32x32xf32, #tpu.memory_space<vmem>>, vector<32x32xf32>
    %cst_44 = arith.constant dense<0.000000e+00> : vector<16x32xf32>
    %99 = tpu.matmul %97, %98, %cst_44 {dimension_numbers = #tpu.dot_dimension_numbers<[1], [1], [0], [0], [0, 0, 1, 0], [], []>} : vector<16x32xf32>, vector<32x32xf32>, vector<16x32xf32> -> vector<16x32xf32>
    %c0_45 = arith.constant 0 : index
    %c0_46 = arith.constant 0 : index
    %100 = vector.load %arg5[%c0_45, %c0_46] : memref<1x32xf32, #tpu.memory_space<vmem>>, vector<1x32xf32>
    %101 = vector.broadcast %100 : vector<1x32xf32> to vector<16x32xf32>
    %102 = arith.addf %99, %101 : vector<16x32xf32>
    %103 = arith.addf %1, %102 : vector<16x32xf32>
    %c0_47 = arith.constant 0 : index
    %c0_48 = arith.constant 0 : index
    %104 = vector.load %arg10[%c0_47, %c0_48] : memref<1x32xf32, #tpu.memory_space<vmem>>, vector<1x32xf32>
    %c0_49 = arith.constant 0 : index
    %c0_50 = arith.constant 0 : index
    %105 = vector.load %arg11[%c0_49, %c0_50] : memref<1x32xf32, #tpu.memory_space<vmem>>, vector<1x32xf32>
    %cst_51 = arith.constant dense<0.000000e+00> : vector<16xf32>
    %106 = vector.multi_reduction <add>, %103, %cst_51 [1] : vector<16x32xf32> to vector<16xf32>
    %107 = vector.shape_cast %106 : vector<16xf32> to vector<16x1xf32>
    %cst_52 = arith.constant 3.200000e+01 : f32
    %108 = vector.broadcast %cst_52 : f32 to vector<16x1xf32>
    %109 = arith.divf %107, %108 : vector<16x1xf32>
    %110 = vector.broadcast %109 : vector<16x1xf32> to vector<16x32xf32>
    %111 = arith.subf %103, %110 : vector<16x32xf32>
    %112 = arith.mulf %111, %111 : vector<16x32xf32>
    %cst_53 = arith.constant dense<0.000000e+00> : vector<16xf32>
    %113 = vector.multi_reduction <add>, %112, %cst_53 [1] : vector<16x32xf32> to vector<16xf32>
    %114 = vector.shape_cast %113 : vector<16xf32> to vector<16x1xf32>
    %cst_54 = arith.constant 3.200000e+01 : f32
    %115 = vector.broadcast %cst_54 : f32 to vector<16x1xf32>
    %116 = arith.divf %114, %115 : vector<16x1xf32>
    %cst_55 = arith.constant 9.99999974E-6 : f32
    %117 = vector.broadcast %cst_55 : f32 to vector<16x1xf32>
    %118 = arith.addf %116, %117 : vector<16x1xf32>
    %119 = math.rsqrt %118 : vector<16x1xf32>
    %120 = vector.broadcast %119 : vector<16x1xf32> to vector<16x32xf32>
    %121 = arith.mulf %111, %120 : vector<16x32xf32>
    %122 = vector.broadcast %104 : vector<1x32xf32> to vector<16x32xf32>
    %123 = arith.mulf %121, %122 : vector<16x32xf32>
    %124 = vector.broadcast %105 : vector<1x32xf32> to vector<16x32xf32>
    %125 = arith.addf %123, %124 : vector<16x32xf32>
    %c0_56 = arith.constant 0 : index
    %c0_57 = arith.constant 0 : index
    %126 = vector.load %arg6[%c0_56, %c0_57] : memref<32x32xf32, #tpu.memory_space<vmem>>, vector<32x32xf32>
    %cst_58 = arith.constant dense<0.000000e+00> : vector<16x32xf32>
    %127 = tpu.matmul %125, %126, %cst_58 {dimension_numbers = #tpu.dot_dimension_numbers<[1], [1], [0], [0], [0, 0, 1, 0], [], []>} : vector<16x32xf32>, vector<32x32xf32>, vector<16x32xf32> -> vector<16x32xf32>
    %c0_59 = arith.constant 0 : index
    %c0_60 = arith.constant 0 : index
    %128 = vector.load %arg7[%c0_59, %c0_60] : memref<1x32xf32, #tpu.memory_space<vmem>>, vector<1x32xf32>
    %129 = vector.broadcast %128 : vector<1x32xf32> to vector<16x32xf32>
    %130 = arith.addf %127, %129 : vector<16x32xf32>
    %cst_61 = arith.constant 0.000000e+00 : f32
    %131 = vector.broadcast %cst_61 : f32 to vector<16x32xf32>
    %132 = arith.maximumf %130, %131 : vector<16x32xf32>
    %c0_62 = arith.constant 0 : index
    %c0_63 = arith.constant 0 : index
    %133 = vector.load %arg8[%c0_62, %c0_63] : memref<32x32xf32, #tpu.memory_space<vmem>>, vector<32x32xf32>
    %cst_64 = arith.constant dense<0.000000e+00> : vector<16x32xf32>
    %134 = tpu.matmul %132, %133, %cst_64 {dimension_numbers = #tpu.dot_dimension_numbers<[1], [1], [0], [0], [0, 0, 1, 0], [], []>} : vector<16x32xf32>, vector<32x32xf32>, vector<16x32xf32> -> vector<16x32xf32>
    %c0_65 = arith.constant 0 : index
    %c0_66 = arith.constant 0 : index
    %135 = vector.load %arg9[%c0_65, %c0_66] : memref<1x32xf32, #tpu.memory_space<vmem>>, vector<1x32xf32>
    %136 = vector.broadcast %135 : vector<1x32xf32> to vector<16x32xf32>
    %137 = arith.addf %134, %136 : vector<16x32xf32>
    %138 = arith.addf %125, %137 : vector<16x32xf32>
    %c0_67 = arith.constant 0 : index
    %c0_68 = arith.constant 0 : index
    %139 = vector.load %arg12[%c0_67, %c0_68] : memref<1x32xf32, #tpu.memory_space<vmem>>, vector<1x32xf32>
    %c0_69 = arith.constant 0 : index
    %c0_70 = arith.constant 0 : index
    %140 = vector.load %arg13[%c0_69, %c0_70] : memref<1x32xf32, #tpu.memory_space<vmem>>, vector<1x32xf32>
    %cst_71 = arith.constant dense<0.000000e+00> : vector<16xf32>
    %141 = vector.multi_reduction <add>, %138, %cst_71 [1] : vector<16x32xf32> to vector<16xf32>
    %142 = vector.shape_cast %141 : vector<16xf32> to vector<16x1xf32>
    %cst_72 = arith.constant 3.200000e+01 : f32
    %143 = vector.broadcast %cst_72 : f32 to vector<16x1xf32>
    %144 = arith.divf %142, %143 : vector<16x1xf32>
    %145 = vector.broadcast %144 : vector<16x1xf32> to vector<16x32xf32>
    %146 = arith.subf %138, %145 : vector<16x32xf32>
    %147 = arith.mulf %146, %146 : vector<16x32xf32>
    %cst_73 = arith.constant dense<0.000000e+00> : vector<16xf32>
    %148 = vector.multi_reduction <add>, %147, %cst_73 [1] : vector<16x32xf32> to vector<16xf32>
    %149 = vector.shape_cast %148 : vector<16xf32> to vector<16x1xf32>
    %cst_74 = arith.constant 3.200000e+01 : f32
    %150 = vector.broadcast %cst_74 : f32 to vector<16x1xf32>
    %151 = arith.divf %149, %150 : vector<16x1xf32>
    %cst_75 = arith.constant 9.99999974E-6 : f32
    %152 = vector.broadcast %cst_75 : f32 to vector<16x1xf32>
    %153 = arith.addf %151, %152 : vector<16x1xf32>
    %154 = math.rsqrt %153 : vector<16x1xf32>
    %155 = vector.broadcast %154 : vector<16x1xf32> to vector<16x32xf32>
    %156 = arith.mulf %146, %155 : vector<16x32xf32>
    %157 = vector.broadcast %139 : vector<1x32xf32> to vector<16x32xf32>
    %158 = arith.mulf %156, %157 : vector<16x32xf32>
    %159 = vector.broadcast %140 : vector<1x32xf32> to vector<16x32xf32>
    %160 = arith.addf %158, %159 : vector<16x32xf32>
    %161 = vector.shape_cast %160 : vector<16x32xf32> to vector<2x8x32xf32>
    %c0_76 = arith.constant 0 : index
    %c0_77 = arith.constant 0 : index
    %c0_78 = arith.constant 0 : index
    %162 = vector.load %arg14[%c0_76, %c0_77, %c0_78] : memref<2x8x32xf32, #tpu.memory_space<vmem>>, vector<2x8x32xf32>
    tpu.vector_store %arg14[%c0_76, %c0_77, %c0_78], %161 {strides = array<i32>} : memref<2x8x32xf32, #tpu.memory_space<vmem>>, vector<2x8x32xf32>,
    return
  }
  func.func @transform_0(%arg0: i32) -> (i32, i32, i32) {
    %c0_i32 = arith.constant 0 : i32
    %c0_i32_0 = arith.constant 0 : i32
    %c0_i32_1 = arith.constant 0 : i32
    return %arg0, %c0_i32, %c0_i32_0 : i32, i32, i32
  }
  func.func @transform_1(%arg0: i32) -> (i32, i32) {
    %c0_i32 = arith.constant 0 : i32
    %c0_i32_0 = arith.constant 0 : i32
    %c0_i32_1 = arith.constant 0 : i32
    return %c0_i32, %c0_i32_0 : i32, i32
  }
  func.func @transform_2(%arg0: i32) -> (i32, i32) {
    %c0_i32 = arith.constant 0 : i32
    %c0_i32_0 = arith.constant 0 : i32
    %c0_i32_1 = arith.constant 0 : i32
    return %c0_i32, %c0_i32_0 : i32, i32
  }
  func.func @transform_3(%arg0: i32) -> (i32, i32) {
    %c0_i32 = arith.constant 0 : i32
    %c0_i32_0 = arith.constant 0 : i32
    %c0_i32_1 = arith.constant 0 : i32
    return %c0_i32, %c0_i32_0 : i32, i32
  }
  func.func @transform_4(%arg0: i32) -> (i32, i32) {
    %c0_i32 = arith.constant 0 : i32
    %c0_i32_0 = arith.constant 0 : i32
    %c0_i32_1 = arith.constant 0 : i32
    return %c0_i32, %c0_i32_0 : i32, i32
  }
  func.func @transform_5(%arg0: i32) -> (i32, i32) {
    %c0_i32 = arith.constant 0 : i32
    %c0_i32_0 = arith.constant 0 : i32
    %c0_i32_1 = arith.constant 0 : i32
    return %c0_i32, %c0_i32_0 : i32, i32
  }
  func.func @transform_6(%arg0: i32) -> (i32, i32) {
    %c0_i32 = arith.constant 0 : i32
    %c0_i32_0 = arith.constant 0 : i32
    %c0_i32_1 = arith.constant 0 : i32
    return %c0_i32, %c0_i32_0 : i32, i32
  }
  func.func @transform_7(%arg0: i32) -> (i32, i32) {
    %c0_i32 = arith.constant 0 : i32
    %c0_i32_0 = arith.constant 0 : i32
    %c0_i32_1 = arith.constant 0 : i32
    return %c0_i32, %c0_i32_0 : i32, i32
  }
  func.func @transform_8(%arg0: i32) -> (i32, i32) {
    %c0_i32 = arith.constant 0 : i32
    %c0_i32_0 = arith.constant 0 : i32
    %c0_i32_1 = arith.constant 0 : i32
    return %c0_i32, %c0_i32_0 : i32, i32
  }
  func.func @transform_9(%arg0: i32) -> (i32, i32) {
    %c0_i32 = arith.constant 0 : i32
    %c0_i32_0 = arith.constant 0 : i32
    %c0_i32_1 = arith.constant 0 : i32
    return %c0_i32, %c0_i32_0 : i32, i32
  }
  func.func @transform_10(%arg0: i32) -> (i32, i32) {
    %c0_i32 = arith.constant 0 : i32
    %c0_i32_0 = arith.constant 0 : i32
    %c0_i32_1 = arith.constant 0 : i32
    return %c0_i32, %c0_i32_0 : i32, i32
  }
  func.func @transform_11(%arg0: i32) -> (i32, i32) {
    %c0_i32 = arith.constant 0 : i32
    %c0_i32_0 = arith.constant 0 : i32
    %c0_i32_1 = arith.constant 0 : i32
    return %c0_i32, %c0_i32_0 : i32, i32
  }
  func.func @transform_12(%arg0: i32) -> (i32, i32) {
    %c0_i32 = arith.constant 0 : i32
    %c0_i32_0 = arith.constant 0 : i32
    %c0_i32_1 = arith.constant 0 : i32
    return %c0_i32, %c0_i32_0 : i32, i32
  }
  func.func @transform_13(%arg0: i32) -> (i32, i32, i32) {
    %c0_i32 = arith.constant 0 : i32
    %c0_i32_0 = arith.constant 0 : i32
    %c0_i32_1 = arith.constant 0 : i32
    return %arg0, %c0_i32, %c0_i32_0 : i32, i32, i32
  }
}

</mosaic_0001>

<bundles_post_ra>
// kernel: tpu_custom_call.1
= control target key start
LH: loop header
LB: loop body
LE: loop exit
PB: predicated region body
PF: predicated region fallthrough
CT: control target
= control target key end

     0   :  { %18 = vsyncpa [#allocation4], 0  ;;  %s2134_s0 = inlined_call_operand.vmem [shape: f32[4,8,32], index: 0, kind: input, shape index: {}]   ;;  %s2135_s1 = inlined_call_operand.vmem [shape: f32[96,32], index: 1, kind: input, shape index: {}]   ;;  %s2136_s2 = inlined_call_operand.vmem [shape: f32[1,96], index: 2, kind: input, shape index: {}]   ;;  %s2137_s3 = inlined_call_operand.vmem [shape: f32[32,32], index: 3, kind: input, shape index: {}]   ;;  %s2138_s4 = inlined_call_operand.vmem [shape: f32[1,32], index: 4, kind: input, shape index: {}]   ;;  %s2139_s5 = inlined_call_operand.vmem [shape: f32[32,32], index: 5, kind: input, shape index: {}]   ;;  %s2140_s6 = inlined_call_operand.vmem [shape: f32[1,32], index: 6, kind: input, shape index: {}]   ;;  %s2141_s7 = inlined_call_operand.vmem [shape: f32[32,32], index: 7, kind: input, shape index: {}]   ;;  %s2142_s8 = inlined_call_operand.vmem [shape: f32[1,32], index: 8, kind: input, shape index: {}]   ;;  %s2143_s9 = inlined_call_operand.vmem [shape: f32[1,32], index: 9, kind: input, shape index: {}]   ;;  %s2144_s10 = inlined_call_operand.vmem [shape: f32[1,32], index: 10, kind: input, shape index: {}]   ;;  %s2145_s11 = inlined_call_operand.vmem [shape: f32[1,32], index: 11, kind: input, shape index: {}]   ;;  %s2146_s12 = inlined_call_operand.vmem [shape: f32[1,32], index: 12, kind: input, shape index: {}]   ;;  %s2147_s13 = inlined_call_operand.hbm [shape: f32[4,8,32], index: 13, kind: output, shape index: {}]  }
   0x1   :  { %20 = vsyncpa [#allocation4 + $0x1], 0  ;;  %s1786_s25 = smov 0   ;;  %s1788_s26 = smov 0  }
   0x2   :  { %s1790_s27 = smov 0   ;;  %s1792_s28 = smov 0  }
   0x3 LB: > { %2152 = sst [smem:[#allocation6_spill]] %s1694_s27  ;;  %s1807_s29 = sadd.s32 4294967295, %s1698_s28   ;;  %s1698_s28 = sphi %s1792_s28, %s2158_s28   ;;  %s1694_s27 = sphi %s1790_s27, %s2163_s27   ;;  %s1690_s26 = sphi %s1788_s26, %s2162_s26   ;;  %s1686_s25 = sphi %s1786_s25, %s2161_s25  }
   0x4   : > { %s1462_s30 = sadd.s32 4294967294, %s1698_s28   ;;  %s1811_s14 = sadd.s32 1, %s1698_s28  }
   0x5   : > { %2153 = sst [smem:[#allocation7_spill]] %s1811_s14  ;;  %s311_s15 = sadd.s32 1, %s1694_s27 }
   0x6   : > { %s308_s16 = ssub.s32 %s1698_s28, %s1811_s14  ;;  %p321_p0 = scmp.ne.s32.totalorder %s1694_s27, %s1690_s26 }
   0x7   : > { %p309_p1 = scmp.eq.s32.totalorder %s308_s16, 0  ;;  %p322_p2 = scmp.eq.s32.totalorder %s1807_s29, 1 }
   0x8   : > { %p327_p3 = scmp.ne.s32.totalorder %s1690_s26, %s1686_s25  ;;  %p328_p4 = scmp.eq.s32.totalorder %s1462_s30, 1 }
   0x9   : > { %s1822_s17 = scalar_select %p309_p1, %s1694_s27, %s311_s15  }
   0xa   : > { %p1824_p5 = por %p322_p2, %p321_p0  ;;  %p1828_p6 = por %p328_p4, %p327_p3 }
   0xb   : > { %2154 = sst [smem:[#allocation8_spill]] %s1822_s17  ;;  %p1465_p7 = scmp.ge.s32.totalorder %s1698_s28, 1 }
   0xc   : > { %p391_p8 = scmp.lt.s32.totalorder %s1698_s28, 3 }
   0xe   : > { %p392_p9 = pnand %p1465_p7, %p391_p8 }
   0xf   : > { %s1467_s20 = sshll.u32 (!%p392_p9), %s1807_s29, 1  ;;  %s1700_s27 = smov (!%p392_p9), 88  }
  0x10   : > { %395 = sbr.rel (%p392_p9) target bundleno = 2361 (0x939), region = 72  ;;  %p436_p10 = scmp.lt.s32.totalorder (!%p392_p9), %s1467_s20, 3 }
  0x11   : > { %s1702_s23 = smov (!%p392_p9), 120   ;;  %s1703_s24 = smov (!%p392_p9), 112  }
  0x12   : > { %s1704_s30 = smov (!%p392_p9), 80   ;;  %s1706_s16 = smov (!%p392_p9), 64  }
  0x13   : > { %s1707_s17 = smov (!%p392_p9), 72   ;;  %s1708_s21 = smov (!%p392_p9), 48  }
  0x14   : > { %s1710_s22 = smov (!%p392_p9), 40  }
  0x15   : > { %v455_v0 = vld [vmem:[%s2135_s1 + $0x58] sm:$0xff]  ;;  %vm460_vm0 = vcmask 261120   ;;  %v454_v1 = vld [vmem:[%s2135_s1 + $0x50] sm:$0xff]  ;;  %v453_v2 = vld [vmem:[%s2135_s1 + $0x48] sm:$0xff]  ;;  %s2165_s20 = smov (!%p436_p10, %s1467_s20), 3  ;;  %vm531_vm1 = vcmask 64512  }
  0x16   : > { %1469 = vmatpush.xpose.msk.msra.mxu0 %vm460_vm0, %v455_v0  ;;  %v452_v3 = vld [vmem:[%s2135_s1 + $0x40] sm:$0xff]  ;;  %v451_v4 = vld [vmem:[%s2135_s1 + $0x38] sm:$0xff]  ;;  %v450_v5 = vld [vmem:[%s2135_s1 + $0x30] sm:$0xff]  ;;  %s1468_s15 = sshll.u32 %s2165_s20, 3  ;;  %s1709_s20 = smov 104   ;;  %vm811_vm2 = vcmask 130112  }
  0x17   : > { %v449_v6 = vld [vmem:[%s2135_s1 + $0x28] sm:$0xff]  ;;  %v448_v7 = vld [vmem:[%s2135_s1 + $0x20] sm:$0xff]  ;;  %v447_v8 = vld [vmem:[%s2135_s1 + $0x18] sm:$0xff]  ;;  %s439_s14 = scalar_lea.vmem %s2134_s0, %s1468_s15  ;;  %s1705_s15 = smov 56   ;;  %vm958_vm3 = vcmask 195712   ;;  %vm1105_vm4 = vcmask 261312  }
  0x18   : > { %v446_v9 = vld [vmem:[%s2135_s1 + $0x10] sm:$0xff]  ;;  %v445_v10 = vld [vmem:[%s2135_s1 + $0x8] sm:$0xff]  ;;  %v444_v11 = vld [vmem:[%s2135_s1] sm:$0xff] }
  0x19   : > { %v1886_v12 = vld [vmem:[%s439_s14] sm:$0xff]  ;;  %v1890_v13 = vld [vmem:[%s439_s14 + $0x8] sm:$0xff]  ;;  %s1701_s14 = smov 96  }
  0x1a   : > { %1470 = vmatpush.xpose.msk.msra.mxu0 %vm460_vm0, %v454_v1  ;;  %v1586_v14 = vld [vmem:[%s2136_s2] ss:$0 sm:$0xff] }
  0x1e   : > { %1471 = vmatpush.xpose.msk.msra.mxu0 %vm460_vm0, %v453_v2 }
  0x22   : > { %1472 = vmatpush.xpose.msk.msra.mxu0 %vm460_vm0, %v452_v3 }
  0x26   : > { %1473 = vmatpush.xpose.msk.msra.mxu0 %vm460_vm0, %v451_v4 }
  0x2a   : > { %1474 = vmatpush.xpose.msk.msra.mxu0 %vm460_vm0, %v450_v5 }
  0x2e   : > { %1475 = vmatpush.xpose.msk.msra.mxu0 %vm460_vm0, %v449_v6 }
  0x32   : > { %1476 = vmatpush.xpose.msk.msra.mxu0 %vm460_vm0, %v448_v7 }
  0x36   : > { %1477 = vmatpush.xpose.msk.msra.mxu0 %vm460_vm0, %v447_v8 }
  0x3a   : > { %1478 = vmatpush.xpose.msk.msra.mxu0 %vm460_vm0, %v446_v9 }
  0x3e   : > { %1479 = vmatpush.xpose.msk.msra.mxu0 %vm460_vm0, %v445_v10 }
  0x42   : > { %1480 = vmatpush.xpose.msk.msra.mxu0 %vm460_vm0, %v444_v11 }
  0x45   : > { %1481 = vmatmul.msk.f32.vlgmr.msra.gmra.mxu0 %vm460_vm0, %v1886_v12 }
  0x4d   : > { %1482 = vmatmul.msk.f32.gmra.mxu0 %vm460_vm0, %v1890_v13 }
  0xc2   : > { %v520_v15 = vpop.f32.mrf.mxu0 }
  0xc3   : > { %v1897_v16 = vadd.f32 %v1586_v14, %v520_v15 }
  0xc5   : > { %669 = vrot.lane.b32.xlu1 %v1897_v16, %s1700_s27  ;;  %v1903_v19 = vmul.f32 0.35355338, %v1897_v16 }
  0xca   : > { %v523_v17 = vpop.f32.mrf.mxu0 }
  0xcb   : > { %v1900_v18 = vadd.f32 %v1586_v14, %v523_v17 }
  0xcd   : > { %697 = vrot.lane.b32.xlu2 %v1900_v18, %s1700_s27  ;;  %558 = vrot.lane.b32.xlu0 %v1900_v18, %s1701_s14  ;;  %v1909_v20 = vmul.f32 0.35355338, %v1900_v18  ;;  %s1711_s27 = smov 16  }
  0xce   : > { %667 = vrot.lane.b32.xlu1 %v1903_v19, %s1702_s23 }
  0xd5   : > { %695 = vrot.lane.b32.xlu2 %v1909_v20, %s1702_s23  ;;  %529 = vrot.lane.b32.xlu0 %v1897_v16, %s1701_s14  ;;  %s2151_s14 = smov 8   ;;  %s1713_s23 = smov 24  }
  0xd6   : > { %814 = vrot.lane.b32.xlu1 %v1903_v19, %s1703_s24 }
  0xdd   : > { %816 = vrot.lane.b32.xlu0 %v1897_v16, %s1704_s30 }
 0x127   : > { %v698_v23 = vpop.permute.xlu2 %697 }
 0x12f   : > { %v696_v26 = vpop.permute.xlu2 %695 }
 0x137   : > { %v670_v21 = vpop.permute.xlu1 %669 }
 0x13f   : > { %v559_v22 = vpop.permute.xlu0 %558 }
 0x140   : > { %1485 = vmatpush.xpose.msk.msra.mxu2 %vm531_vm1, %v559_v22  ;;  %v668_v25 = vpop.permute.xlu1 %667 }
 0x143   : > { %1486 = vmatmul.msk.f32.vlgmr.msra.gmra.mxu2 %vm531_vm1, %v1909_v20 }
 0x144   : > { %1491 = vmatpush.xpose.msk.msrb.mxu2 %vm531_vm1, %v698_v23 }
 0x147   : > { %v530_v24 = vpop.permute.xlu0 %529 }
 0x148   : > { %1483 = vmatpush.xpose.msk.msra.mxu1 %vm531_vm1, %v530_v24  ;;  %v815_v28 = vpop.permute.xlu1 %814 }
 0x14b   : > { %1484 = vmatmul.msk.f32.vlgmr.msra.gmra.mxu1 %vm531_vm1, %v1903_v19  ;;  %1492 = vmatmul.msk.f32.vlgmr.msrb.gmra.mxu2 %vm531_vm1, %v696_v26 }
 0x14c   : > { %1489 = vmatpush.xpose.msk.msrb.mxu1 %vm531_vm1, %v670_v21 }
 0x14f   : > { %v817_v27 = vpop.permute.xlu0 %816 }
 0x150   : > { %1495 = vmatpush.xpose.msk.msra.mxu2 %vm531_vm1, %v817_v27 }
 0x153   : > { %1490 = vmatmul.msk.f32.vlgmr.msrb.gmra.mxu1 %vm531_vm1, %v668_v25  ;;  %1496 = vmatmul.msk.f32.vlgmr.msra.gmra.mxu2 %vm531_vm1, %v815_v28 }
 0x1c6   : > { %v582_v29 = vpop.f32.mrf.mxu2 }
 0x1c7   : > { %v588_v30 = vsel %vm531_vm1, %v582_v29, -inf }
 0x1c8   : > { %589 = vmax.xlane.f32.xlu2 %v588_v30  ;;  %v1930_v31 = vpop.f32.mrf.mxu1 }
 0x1ce   : > { %v720_v32 = vpop.f32.mrf.mxu2 }
 0x1cf   : > { %v726_v33 = vsel %vm531_vm1, %v720_v32, -inf }
 0x1d0   : > { %727 = vmax.xlane.f32.xlu1 %v726_v33  ;;  %v692_v34 = vpop.f32.mrf.mxu1 }
 0x1d1   : > { %v723_v35 = vsel %vm531_vm1, %v692_v34, -inf }
 0x1d2   : > { %724 = vmax.xlane.f32.xlu0 %v723_v35 }
 0x1d6   : > { %v839_v36 = vpop.f32.mrf.mxu2 }
 0x1d7   : > { %v870_v37 = vsel %vm531_vm1, %v839_v36, -inf }
 0x1d8   : > { %871 = vmax.xlane.f32.xlu2 %v870_v37 }
 0x1e6   : > { %751 = vrot.lane.b32.xlu0 %v1897_v16, %s1705_s15 }
 0x1e9   : > { %639 = vrot.lane.b32.xlu1 %v1900_v18, %s1706_s16 }
 0x1f0   : > { %844 = vrot.lane.b32.xlu2 %v1900_v18, %s1704_s30 }
 0x23b   : > { %v590_v38 = vpop.xlane.xlu2 %589 }
 0x23c   : > { %v592_v39 = vsub.f32 %v582_v29, %v590_v38 }
 0x23e   : > { %v595_v40 = vmul.f32 1.442695, %v592_v39 }
 0x240   : > { %1594 = vpow2.f32 %v595_v40 }
 0x243   : > { %v728_v41 = vpop.xlane.xlu1 %727 }
 0x244   : > { %v730_v42 = vsub.f32 %v720_v32, %v728_v41 }
 0x245   : > { %v725_v43 = vpop.xlane.xlu0 %724 }
 0x246   : > { %v1595_v44 = vpop.eup %1594  ;;  %v733_v45 = vmul.f32 1.442695, %v730_v42  ;;  %v729_v46 = vsub.f32 %v692_v34, %v725_v43  ;;  %v585_v43 = vsel %vm531_vm1, %v1930_v31, -inf }
 0x247   : > { %v600_v47 = vsel %vm531_vm1, %v1595_v44, 0.0 }
 0x248   : > { %1596 = vpow2.f32 %v733_v45  ;;  %v731_v48 = vmul.f32 1.442695, %v729_v46  ;;  %601 = vadd.xlane.f32.xlu2 %v600_v47 }
 0x24a   : > { %1598 = vpow2.f32 %v731_v48 }
 0x24b   : > { %v872_v49 = vpop.xlane.xlu2 %871 }
 0x24c   : > { %v876_v50 = vsub.f32 %v839_v36, %v872_v49 }
 0x24e   : > { %v1597_v51 = vpop.eup %1596  ;;  %v878_v52 = vmul.f32 1.442695, %v876_v50 }
 0x24f   : > { %v738_v53 = vsel %vm531_vm1, %v1597_v51, 0.0 }
 0x250   : > { %v1599_v54 = vpop.eup %1598  ;;  %1600 = vpow2.f32 %v878_v52  ;;  %739 = vadd.xlane.f32.xlu2 %v738_v53 }
 0x251   : > { %v735_v55 = vsel %vm531_vm1, %v1599_v54, 0.0 }
 0x252   : > { %736 = vadd.xlane.f32.xlu0 %v735_v55 }
 0x253   : > { %v845_v60 = vpop.permute.xlu2 %844 }
 0x256   : > { %v1601_v56 = vpop.eup %1600 }
 0x257   : > { %v882_v57 = vsel %vm531_vm1, %v1601_v56, 0.0 }
 0x258   : > { %883 = vadd.xlane.f32.xlu1 %v882_v57  ;;  %v752_v59 = vpop.permute.xlu0 %751 }
 0x25b   : > { %v640_v58 = vpop.permute.xlu1 %639 }
 0x25c   : > { %660 = vmatpush.msra.mxu3 %v640_v58 }
 0x25e   : > { %772 = vmatpush.msrb.mxu3 %v752_v59 }
 0x266   : > { %842 = vrot.lane.b32.xlu0 %v1909_v20, %s1703_s24  ;;  %s1530_s24 = sshll.u32 %s1807_s29, 4 }
 0x268   : > { %963 = vrot.lane.b32.xlu2 %v1897_v16, %s1707_s17 }
 0x26e   : > { %777 = vrot.lane.b32.xlu0 %v1900_v18, %s1705_s15 }
 0x270   : > { %898 = vrot.lane.b32.xlu2 %v1897_v16, %s1708_s21 }
 0x276   : > { %961 = vrot.lane.b32.xlu0 %v1903_v19, %s1709_s20 }
 0x278   : > { %989 = vrot.lane.b32.xlu2 %v1909_v20, %s1709_s20 }
 0x27e   : > { %991 = vrot.lane.b32.xlu0 %v1900_v18, %s1707_s17  ;;  %s432_s17 = sand.u32 1, %s1690_s26  }
 0x27f   : > { %s1385_s29 = scalar_lea.sflag [#allocation4], %s432_s17 }
 0x2bb   : > { %v602_v61 = vpop.xlane.xlu2 %601 }
 0x2bc   : > { %1602 = vrcp.f32 %v602_v61 }
 0x2c2   : > { %v1603_v62 = vpop.eup %1602 }
 0x2c3   : > { %v606_v63 = vmul.f32 %v1603_v62, %v602_v61  ;;  %v740_v3 = vpop.xlane.xlu2 %739 }
 0x2c5   : > { %v608_v0 = vsub.f32 2.0, %v606_v63  ;;  %v737_v1 = vpop.xlane.xlu0 %736 }
 0x2c6   : > { %1604 = vrcp.f32 %v737_v1 }
 0x2c7   : > { %v610_v2 = vmul.f32 %v1603_v62, %v608_v0  ;;  %1606 = vrcp.f32 %v740_v3 }
 0x2c9   : > { %v612_v4 = vmul.f32 %v1595_v44, %v610_v2 }
 0x2cb   : > { %1488 = vmatmul.msk.f32.vlgmr.msra.gmra.mxu3 %vm531_vm1, %v612_v4  ;;  %v884_v8 = vpop.xlane.xlu1 %883  ;;  %v964_v15 = vpop.permute.xlu2 %963 }
 0x2cc   : > { %v1605_v5 = vpop.eup %1604  ;;  %1497 = vmatpush.xpose.msk.msra.mxu3 %vm531_vm1, %v845_v60  ;;  %1608 = vrcp.f32 %v884_v8 }
 0x2cd   : > { %v743_v6 = vmul.f32 %v1605_v5, %v737_v1  ;;  %v1607_v9 = vpop.eup %1606 }
 0x2ce   : > { %v744_v14 = vmul.f32 %v1607_v9, %v740_v3 }
 0x2cf   : > { %v745_v7 = vsub.f32 2.0, %v743_v6 }
 0x2d0   : > { %v746_v17 = vsub.f32 2.0, %v744_v14 }
 0x2d1   : > { %v747_v10 = vmul.f32 %v1605_v5, %v745_v7 }
 0x2d2   : > { %v1609_v20 = vpop.eup %1608  ;;  %v748_v21 = vmul.f32 %v1607_v9, %v746_v17 }
 0x2d3   : > { %v749_v11 = vmul.f32 %v1599_v54, %v747_v10  ;;  %v890_v22 = vmul.f32 %v1609_v20, %v884_v8  ;;  %v899_v26 = vpop.permute.xlu2 %898 }
 0x2d4   : > { %v750_v23 = vmul.f32 %v1597_v51, %v748_v21 }
 0x2d5   : > { %1493 = vmatmul.msk.f32.vlgmr.msrb.gmra.mxu3 %vm531_vm1, %v749_v11  ;;  %v892_v24 = vsub.f32 2.0, %v890_v22 }
 0x2d6   : > { %1501 = vmatpush.xpose.msk.msrb.mxu3 %vm531_vm1, %v964_v15 }
 0x2d7   : > { %v894_v27 = vmul.f32 %v1609_v20, %v892_v24 }
 0x2d8   : > { %v843_v19 = vpop.permute.xlu0 %842 }
 0x2d9   : > { %v896_v28 = vmul.f32 %v1601_v56, %v894_v27 }
 0x2db   : > { %v990_v32 = vpop.permute.xlu2 %989 }
 0x2dd   : > { %1498 = vmatmul.msk.f32.vlgmr.msra.gmra.mxu3 %vm531_vm1, %v843_v19 }
 0x2e0   : > { %v778_v25 = vpop.permute.xlu0 %777 }
 0x2e1   : > { %798 = vmatpush.msra.mxu1 %v778_v25 }
 0x2e2   : > { %1494 = vmatmul.msk.f32.vlgmr.msra.gmra.mxu1 %vm531_vm1, %v750_v23 }
 0x2e3   : > { %919 = vmatpush.msrb.mxu1 %v899_v26 }
 0x2e8   : > { %v962_v29 = vpop.permute.xlu0 %961 }
 0x2e9   : > { %1502 = vmatmul.msk.f32.vlgmr.msrb.gmra.mxu3 %vm531_vm1, %v962_v29 }
 0x2ea   : > { %1499 = vmatmul.msk.f32.vlgmr.msrb.gmra.mxu1 %vm531_vm1, %v896_v28 }
 0x2f0   : > { %v992_v30 = vpop.permute.xlu0 %991 }
 0x2f1   : > { %1503 = vmatpush.xpose.msk.msra.mxu1 %vm531_vm1, %v992_v30 }
 0x2f4   : > { %1504 = vmatmul.msk.f32.vlgmr.msra.gmra.mxu1 %vm531_vm1, %v990_v32 }
 0x34e   : > { %v662_v33 = vpop.f32.mrf.mxu3 }
 0x34f   : > { %666 = vst.msk [vmem:[#allocation2 + $0x8] sm:$0xff] %vm531_vm1, %v662_v33 }
 0x358   : > { %v774_v34 = vpop.f32.mrf.mxu3 }
 0x35f   : > { %v800_v35 = vpop.f32.mrf.mxu1 }
 0x360   : > { %v867_v36 = vpop.f32.mrf.mxu3 }
 0x361   : > { %v873_v37 = vsel %vm531_vm1, %v867_v36, -inf }
 0x362   : > { %874 = vmax.xlane.f32.xlu0 %v873_v37  ;;  %v1113_v37 = vld [vmem:[%s2137_s3 + $0x18] sm:$0xff] }
 0x363   : > { %1507 = vmatpush.xpose.msk.msrb.mxu1 %vm460_vm0, %v1113_v37 }
 0x367   : > { %v921_v38 = vpop.f32.mrf.mxu1 }
 0x36c   : > { %v986_v39 = vpop.f32.mrf.mxu3 }
 0x36d   : > { %v1017_v40 = vsel %vm531_vm1, %v986_v39, -inf }
 0x36e   : > { %1018 = vmax.xlane.f32.xlu2 %v1017_v40  ;;  %v1110_v40 = vld [vmem:[%s2137_s3] sm:$0xff] }
 0x371   : > { %v1014_v41 = vpop.f32.mrf.mxu1 }
 0x372   : > { %v1020_v42 = vsel %vm531_vm1, %v1014_v41, -inf }
 0x373   : > { %1021 = vmax.xlane.f32.xlu1 %v1020_v42 }
 0x37b   : > { %586 = vmax.xlane.f32.xlu1 %v585_v43 }
 0x386   : > { %1045 = vrot.lane.b32.xlu2 %v1897_v16, %s1710_s22 }
 0x38e   : > { %613 = vrot.lane.b32.xlu2 %v1897_v16, %s1706_s16  ;;  %s1656_s16 = scalar_lea.hbm %s2147_s13, 32 }
 0x396   : > { %952 = vrot.lane.b32.xlu2 %v921_v38, %s1711_s27  ;;  %v1112_v38 = vld [vmem:[%s2137_s3 + $0x10] sm:$0xff] }
 0x397   : > { %1508 = vmatpush.xpose.msk.msrb.mxu1 %vm460_vm0, %v1112_v38 }
 0x39e   : > { %807 = vrot.lane.b32.xlu2 %v800_v35, %s2151_s14 }
 0x3d5   : > { %v875_v44 = vpop.xlane.xlu0 %874 }
 0x3d6   : > { %v877_v45 = vsub.f32 %v867_v36, %v875_v44 }
 0x3d8   : > { %v880_v46 = vmul.f32 1.442695, %v877_v45 }
 0x3da   : > { %1610 = vpow2.f32 %v880_v46  ;;  %v1587_v46 = vld [vmem:[%s2138_s4] ss:$0 sm:$0xff] }
 0x3e0   : > { %v1611_v47 = vpop.eup %1610 }
 0x3e1   : > { %v1019_v48 = vpop.xlane.xlu2 %1018  ;;  %v885_v49 = vsel %vm531_vm1, %v1611_v47, 0.0 }
 0x3e2   : > { %v1023_v50 = vsub.f32 %v986_v39, %v1019_v48  ;;  %886 = vadd.xlane.f32.xlu1 %v885_v49  ;;  %v1111_v39 = vld [vmem:[%s2137_s3 + $0x8] sm:$0xff] }
 0x3e3   : > { %1509 = vmatpush.xpose.msk.msrb.mxu1 %vm460_vm0, %v1111_v39 }
 0x3e4   : > { %v1025_v51 = vmul.f32 1.442695, %v1023_v50 }
 0x3e6   : > { %1612 = vpow2.f32 %v1025_v51  ;;  %v1022_v52 = vpop.xlane.xlu1 %1021 }
 0x3e7   : > { %v1024_v16 = vsub.f32 %v1014_v41, %v1022_v52  ;;  %1510 = vmatpush.xpose.msk.msrb.mxu1 %vm460_vm0, %v1110_v40 }
 0x3e9   : > { %v1027_v53 = vmul.f32 1.442695, %v1024_v16  ;;  %v1046_v54 = vpop.permute.xlu2 %1045 }
 0x3eb   : > { %1614 = vpow2.f32 %v1027_v53 }
 0x3ec   : > { %v1613_v55 = vpop.eup %1612 }
 0x3ed   : > { %v1029_v56 = vsel %vm531_vm1, %v1613_v55, 0.0 }
 0x3ee   : > { %1030 = vadd.xlane.f32.xlu1 %v1029_v56  ;;  %v587_v62 = vpop.xlane.xlu1 %586 }
 0x3ef   : > { %v591_v63 = vsub.f32 %v1930_v31, %v587_v62 }
 0x3f1   : > { %v1615_v57 = vpop.eup %1614  ;;  %v614_v58 = vpop.permute.xlu2 %613  ;;  %v593_v0 = vmul.f32 1.442695, %v591_v63 }
 0x3f2   : > { %634 = vmatpush.msrb.mxu0 %v614_v58  ;;  %v1032_v59 = vsel %vm531_vm1, %v1615_v57, 0.0 }
 0x3f3   : > { %1033 = vadd.xlane.f32.xlu0 %v1032_v59  ;;  %1616 = vpow2.f32 %v593_v0 }
 0x3f9   : > { %v1980_v60 = vpop.permute.xlu2 %952  ;;  %v1617_v1 = vpop.eup %1616 }
 0x3fa   : > { %v597_v2 = vsel %vm531_vm1, %v1617_v1, 0.0 }
 0x401   : > { %v808_v61 = vpop.permute.xlu2 %807 }
 0x402   : > { %813 = vst.msk [vmem:[#allocation2 + $0x8] sm:$0xff] %vm811_vm2, %v808_v61 }
 0x407   : > { %1071 = vrot.lane.b32.xlu0 %v1900_v18, %s1710_s22  ;;  %924 = vrot.lane.b32.xlu1 %v1900_v18, %s1708_s21  ;;  %s1396_s21 = scalar_lea.hbm %s2147_s13, %s1530_s24 }
 0x408   : > { %s1399_s22 = sshll.u32 %s1396_s21, 4  ;;  %s1400_s22 = int_to_ptr.hbm [resolvable:$true] %s1399_s22 }
 0x40f   : > { %805 = vrot.lane.b32.xlu0 %v774_v34, %s2151_s14 }
 0x431   : > { %598 = vadd.xlane.f32.xlu1 %v597_v2 }
 0x455   : > { %v887_v3 = vpop.xlane.xlu1 %886 }
 0x456   : > { %1618 = vrcp.f32 %v887_v3 }
 0x45c   : > { %v1619_v6 = vpop.eup %1618 }
 0x45d   : > { %v891_v18 = vmul.f32 %v1619_v6, %v887_v3 }
 0x45f   : > { %v893_v9 = vsub.f32 2.0, %v891_v18  ;;  %v1224_v18 = vld [vmem:[%s2139_s5] sm:$0xff] }
 0x461   : > { %v1031_v5 = vpop.xlane.xlu1 %1030  ;;  %v895_v31 = vmul.f32 %v1619_v6, %v893_v9  ;;  %v1226_v6 = vld [vmem:[%s2139_s5 + $0x10] sm:$0xff] }
 0x463   : > { %v897_v17 = vmul.f32 %v1611_v47, %v895_v31  ;;  %v1277_v31 = vld [vmem:[%s2141_s7 + $0x10] sm:$0xff] }
 0x466   : > { %v1034_v4 = vpop.xlane.xlu0 %1033 }
 0x467   : > { %1620 = vrcp.f32 %v1034_v4 }
 0x468   : > { %1622 = vrcp.f32 %v1031_v5 }
 0x46d   : > { %v1621_v7 = vpop.eup %1620 }
 0x46e   : > { %v1038_v8 = vmul.f32 %v1621_v7, %v1034_v4  ;;  %v1623_v11 = vpop.eup %1622 }
 0x46f   : > { %v1037_v14 = vmul.f32 %v1623_v11, %v1031_v5  ;;  %v1227_v5 = vld [vmem:[%s2139_s5 + $0x18] sm:$0xff] }
 0x470   : > { %v1040_v10 = vsub.f32 2.0, %v1038_v8 }
 0x471   : > { %v1039_v19 = vsub.f32 2.0, %v1037_v14 }
 0x472   : > { %v1042_v15 = vmul.f32 %v1621_v7, %v1040_v10  ;;  %v1225_v7 = vld [vmem:[%s2139_s5 + $0x8] sm:$0xff] }
 0x473   : > { %v1041_v23 = vmul.f32 %v1623_v11, %v1039_v19  ;;  %v1278_v11 = vld [vmem:[%s2141_s7 + $0x18] sm:$0xff] }
 0x474   : > { %v1044_v20 = vmul.f32 %v1615_v57, %v1042_v15 }
 0x475   : > { %v1043_v24 = vmul.f32 %v1613_v55, %v1041_v23 }
 0x479   : > { %v1072_v21 = vpop.permute.xlu0 %1071  ;;  %v925_v22 = vpop.permute.xlu1 %924 }
 0x47a   : > { %945 = vmatpush.msrb.mxu2 %v925_v22  ;;  %1092 = vmatpush.msra.mxu3 %v1072_v21  ;;  %v1276_v21 = vld [vmem:[%s2141_s7 + $0x8] sm:$0xff] }
 0x47b   : > { %1500 = vmatmul.msk.f32.vlgmr.msrb.gmra.mxu2 %vm531_vm1, %v897_v17  ;;  %1506 = vmatmul.msk.f32.vlgmr.msra.gmra.mxu3 %vm531_vm1, %v1044_v20 }
 0x47c   : > { %1066 = vmatpush.msra.mxu2 %v1046_v54  ;;  %v1714_v54 = vmov 32.0   ;;  %1519 = vmatpush.xpose.msk.msrb.mxu3 %vm460_vm0, %v1278_v11 }
 0x47e   : > { %1513 = vmatpush.xpose.msk.msrb.mxu2 %vm460_vm0, %v1227_v5 }
 0x480   : > { %1520 = vmatpush.xpose.msk.msrb.mxu3 %vm460_vm0, %v1277_v31 }
 0x481   : > { %v806_v36 = vpop.permute.xlu0 %805 }
 0x482   : > { %1514 = vmatpush.xpose.msk.msrb.mxu2 %vm460_vm0, %v1226_v6 }
 0x483   : > { %1505 = vmatmul.msk.f32.vlgmr.msra.gmra.mxu2 %vm531_vm1, %v1043_v24 }
 0x484   : > { %1521 = vmatpush.xpose.msk.msrb.mxu3 %vm460_vm0, %v1276_v21  ;;  %v1593_v21 = vld [vmem:[%s2146_s12] ss:$0 sm:$0xff] }
 0x486   : > { %1515 = vmatpush.xpose.msk.msrb.mxu2 %vm460_vm0, %v1225_v7 }
 0x48a   : > { %1516 = vmatpush.xpose.msk.msrb.mxu2 %vm460_vm0, %v1224_v18 }
 0x4a4   : > { %v599_v25 = vpop.xlane.xlu1 %598 }
 0x4a5   : > { %1624 = vrcp.f32 %v599_v25 }
 0x4a6   : > { %1626 = vrcp.f32 %v1714_v54 }
 0x4ab   : > { %v1625_v26 = vpop.eup %1624 }
 0x4ac   : > { %v605_v27 = vmul.f32 %v1625_v26, %v599_v25  ;;  %v1627_v55 = vpop.eup %1626 }
 0x4ad   : > { %v1170_v56 = vmul.f32 32.0, %v1627_v55  ;;  %vm1174_vm5 = vweird.f32 %v1627_v55 }
 0x4ae   : > { %v607_v28 = vsub.f32 2.0, %v605_v27  ;;  %v1588_v27 = vld [vmem:[%s2143_s9] ss:$0 sm:$0xff] }
 0x4af   : > { %v1171_v57 = vsub.f32 1.0, %v1170_v56 }
 0x4b0   : > { %v609_v29 = vmul.f32 %v1625_v26, %v607_v28 }
 0x4b1   : > { %v1172_v58 = vmul.f32 %v1627_v55, %v1171_v57 }
 0x4b2   : > { %v611_v30 = vmul.f32 %v1617_v1, %v609_v29 }
 0x4b3   : > { %v1173_v59 = vadd.f32 %v1627_v55, %v1172_v58 }
 0x4b4   : > { %1487 = vmatmul.msk.f32.vlgmr.msrb.gmra.mxu0 %vm531_vm1, %v611_v30 }
 0x4fe   : > { %v947_v32 = vpop.f32.mrf.mxu2  ;;  %v1094_v33 = vpop.f32.mrf.mxu3 }
 0x4ff   : > { %1101 = vrot.lane.b32.xlu2 %v1094_v33, %s1713_s23  ;;  %v1589_v33 = vld [vmem:[%s2144_s10] ss:$0 sm:$0xff] }
 0x506   : > { %v1068_v34 = vpop.f32.mrf.mxu2 }
 0x507   : > { %1099 = vrot.lane.b32.xlu0 %v1068_v34, %s1713_s23  ;;  %s1466_s23 = sshll.u32 %s432_s17, 4 }
 0x508   : > { %s434_s30 = scalar_lea.vmem [#allocation3], %s1466_s23 }
 0x509   : > { %s1397_s20 = sshll.u32 %s434_s30, 4  ;;  %s1398_s20 = int_to_ptr.vmem [resolvable:$true] %s1397_s20 }
 0x50f   : > { %954 = vrot.lane.b32.xlu0 %v947_v32, %s1711_s27  ;;  %s1650_s27 = sshra.s32 %s1400_s22, 4  ;;  %s1651_s27 = int_to_ptr.hbm [resolvable:$true] %s1650_s27 }
 0x510   : > { %s1652_s23 = scalar_lea.hbm %s1651_s27, 16  ;;  %p1657_p0 = scmp.lt.s32.totalorder %s1651_s27, %s2147_s13 }
 0x511   : > { %p1653_p11 = scmp.ne.s32.totalorder %s1651_s27, %s1652_s23  ;;  %p1658_p1 = scmp.lt.s32.totalorder %s1656_s16, %s1652_s23 }
 0x513   : > { %p1654_p12 = pnand %p1653_p11, %p1824_p5  ;;  %p1659_p2 = por %p1658_p1, %p1657_p0 }
 0x515   : > { %p1655_p13 = pneg %p1654_p12 }
 0x517   : > { %p1660_p3 = pnand %p1659_p2, %p1655_p13 }
 0x531   : > { %v636_v35 = vpop.f32.mrf.mxu0 }
 0x532   : > { %665 = vst.msk [vmem:[#allocation2] sm:$0xff] %vm531_vm1, %v636_v35 }
 0x533   : > { %812 = vst.msk [vmem:[#allocation2] sm:$0xff] %vm811_vm2, %v806_v36 }
 0x534   : > { %959 = vst.msk [vmem:[#allocation2] sm:$0xff] %vm958_vm3, %v1980_v60  ;;  %v2025_v60 = vsel %vm1174_vm5, %v1627_v55, %v1173_v59 }
 0x559   : > { %v1102_v44 = vpop.permute.xlu2 %1101 }
 0x579   : > { %v1100_v41 = vpop.permute.xlu0 %1099 }
 0x57a   : > { %1106 = vst.msk [vmem:[#allocation2] sm:$0xff] %vm1105_vm4, %v1100_v41 }
 0x581   : > { %v955_v42 = vpop.permute.xlu0 %954  ;;  %v1108_v43 = vld [vmem:[#allocation2] sm:$0xff] }
 0x582   : > { %960 = vst.msk [vmem:[#allocation2 + $0x8] sm:$0xff] %vm958_vm3, %v955_v42  ;;  %1511 = vmatmul.msk.f32.vlgmr.msrb.gmra.mxu1 %vm460_vm0, %v1108_v43  ;;  %v1275_v43 = vld [vmem:[%s2141_s7] sm:$0xff] }
 0x583   : > { %1107 = vst.msk [vmem:[#allocation2 + $0x8] sm:$0xff] %vm1105_vm4, %v1102_v44  ;;  %1522 = vmatpush.xpose.msk.msrb.mxu3 %vm460_vm0, %v1275_v43  ;;  %v1590_v44 = vld [vmem:[%s2140_s6] ss:$0 sm:$0xff] }
 0x58a   : > { %v1109_v45 = vld [vmem:[#allocation2 + $0x8] sm:$0xff] }
 0x58b   : > { %1512 = vmatmul.msk.f32.gmra.mxu1 %vm460_vm0, %v1109_v45 }
 0x5ff   : > { %v1153_v47 = vpop.f32.mrf.mxu1 }
 0x600   : > { %v1154_v48 = vadd.f32 %v1587_v46, %v1153_v47 }
 0x602   : > { %v1159_v49 = vadd.f32 %v1154_v48, %v1886_v12 }
 0x604   : > { %v1163_v50 = vsel %vm460_vm0, %v1159_v49, 0.0 }
 0x605   : > { %1164 = vadd.xlane.f32.xlu0 %v1163_v50 }
 0x608   : > { %v1156_v51 = vpop.f32.mrf.mxu1 }
 0x609   : > { %v1157_v52 = vadd.f32 %v1587_v46, %v1156_v51  ;;  %v1591_v51 = vld [vmem:[%s2142_s8] ss:$0 sm:$0xff] }
 0x60b   : > { %v1160_v16 = vadd.f32 %v1157_v52, %v1890_v13 }
 0x60d   : > { %v1166_v53 = vsel %vm460_vm0, %v1160_v16, 0.0 }
 0x60e   : > { %1167 = vadd.xlane.f32.xlu2 %v1166_v53 }
 0x678   : > { %v1165_v12 = vpop.xlane.xlu0 %1164 }
 0x679   : > { %v1176_v61 = vmul.f32 %v2025_v60, %v1165_v12 }
 0x67b   : > { %v1178_v62 = vsub.f32 %v1159_v49, %v1176_v61 }
 0x67d   : > { %v1180_v63 = vmul.f32 %v1178_v62, %v1178_v62 }
 0x67f   : > { %v1182_v13 = vsel %vm460_vm0, %v1180_v63, 0.0 }
 0x680   : > { %1183 = vadd.xlane.f32.xlu1 %v1182_v13 }
 0x681   : > { %v1168_v0 = vpop.xlane.xlu2 %1167 }
 0x682   : > { %v1177_v1 = vmul.f32 %v2025_v60, %v1168_v0 }
 0x684   : > { %v1179_v2 = vsub.f32 %v1160_v16, %v1177_v1 }
 0x686   : > { %v1181_v3 = vmul.f32 %v1179_v2, %v1179_v2 }
 0x688   : > { %v1185_v4 = vsel %vm460_vm0, %v1181_v3, 0.0 }
 0x689   : > { %1186 = vadd.xlane.f32.xlu1 %v1185_v4 }
 0x6f3   : > { %v1184_v8 = vpop.xlane.xlu1 %1183 }
 0x6f4   : > { %v1188_v9 = vmul.f32 %v1184_v8, %v2025_v60 }
 0x6f6   : > { %v1190_v10 = vadd.f32 1e-05, %v1188_v9 }
 0x6f8   : > { %1628 = vrsqrt.f32 %v1190_v10  ;;  %vm1198_vm7 = vweird.f32 %v1190_v10 }
 0x6fc   : > { %v1187_v14 = vpop.xlane.xlu1 %1186 }
 0x6fd   : > { %v1189_v15 = vmul.f32 %v1187_v14, %v2025_v60 }
 0x6fe   : > { %v1629_v17 = vpop.eup %1628 }
 0x6ff   : > { %v1193_v19 = vmul.f32 %v1629_v17, %v1190_v10  ;;  %v1191_v20 = vadd.f32 1e-05, %v1189_v15  ;;  %vm1199_vm6 = vweird.f32 %v1629_v17 }
 0x700   : > { %vm1200_vm8 = vmor %vm1198_vm7, %vm1199_vm6 }
 0x701   : > { %v1194_v22 = vmul.f32 %v1629_v17, %v1193_v19  ;;  %1630 = vrsqrt.f32 %v1191_v20  ;;  %vm1208_vm10 = vweird.f32 %v1191_v20  ;;  %v1592_v19 = vld [vmem:[%s2145_s11] ss:$0 sm:$0xff] }
 0x703   : > { %v1195_v23 = vmul.f32 0.5, %v1194_v22 }
 0x705   : > { %v1196_v24 = vsub.f32 1.5, %v1195_v23 }
 0x707   : > { %v1631_v25 = vpop.eup %1630  ;;  %v1197_v26 = vmul.f32 %v1629_v17, %v1196_v24 }
 0x708   : > { %v1203_v28 = vmul.f32 %v1631_v25, %v1191_v20  ;;  %vm1209_vm9 = vweird.f32 %v1631_v25 }
 0x709   : > { %v1201_v29 = vsel %vm1200_vm8, %v1629_v17, %v1197_v26  ;;  %vm1210_vm11 = vmor %vm1208_vm10, %vm1209_vm9 }
 0x70a   : > { %v1212_v30 = vmul.f32 %v1201_v29, %v1178_v62  ;;  %v1204_v32 = vmul.f32 %v1631_v25, %v1203_v28 }
 0x70c   : > { %v1217_v34 = vmul.f32 %v1588_v27, %v1212_v30  ;;  %v1205_v35 = vmul.f32 0.5, %v1204_v32 }
 0x70e   : > { %v1206_v36 = vsub.f32 1.5, %v1205_v35  ;;  %v1222_v37 = vadd.f32 %v1589_v33, %v1217_v34 }
 0x710   : > { %v1207_v38 = vmul.f32 %v1631_v25, %v1206_v36  ;;  %1517 = vmatmul.msk.f32.vlgmr.msrb.gmra.mxu2 %vm460_vm0, %v1222_v37 }
 0x712   : > { %v1211_v39 = vsel %vm1210_vm11, %v1631_v25, %v1207_v38 }
 0x713   : > { %v1213_v40 = vmul.f32 %v1211_v39, %v1179_v2 }
 0x715   : > { %v1218_v41 = vmul.f32 %v1588_v27, %v1213_v40 }
 0x717   : > { %v1223_v42 = vadd.f32 %v1589_v33, %v1218_v41 }
 0x719   : > { %1518 = vmatmul.msk.f32.gmra.mxu2 %vm460_vm0, %v1223_v42 }
 0x793   : > { %v1267_v45 = vpop.f32.mrf.mxu2 }
 0x794   : > { %v1268_v46 = vadd.f32 %v1590_v44, %v1267_v45 }
 0x796   : > { %v1273_v47 = vmax.f32 %v1268_v46, 0.0 }
 0x798   : > { %1523 = vmatmul.msk.f32.vlgmr.msrb.gmra.mxu3 %vm460_vm0, %v1273_v47 }
 0x79c   : > { %v1270_v48 = vpop.f32.mrf.mxu2 }
 0x79d   : > { %v1271_v49 = vadd.f32 %v1590_v44, %v1270_v48 }
 0x79f   : > { %v1274_v50 = vmax.f32 %v1271_v49, 0.0 }
 0x7a1   : > { %1524 = vmatmul.msk.f32.gmra.mxu3 %vm460_vm0, %v1274_v50 }
 0x81b   : > { %v1318_v52 = vpop.f32.mrf.mxu3 }
 0x81c   : > { %v1319_v16 = vadd.f32 %v1591_v51, %v1318_v52 }
 0x81e   : > { %v1324_v53 = vadd.f32 %v1319_v16, %v1222_v37 }
 0x820   : > { %v1328_v54 = vsel %vm460_vm0, %v1324_v53, 0.0 }
 0x821   : > { %1329 = vadd.xlane.f32.xlu1 %v1328_v54 }
 0x824   : > { %v1321_v55 = vpop.f32.mrf.mxu3 }
 0x825   : > { %v1322_v56 = vadd.f32 %v1591_v51, %v1321_v55 }
 0x827   : > { %v1325_v57 = vadd.f32 %v1322_v56, %v1223_v42 }
 0x829   : > { %v1331_v58 = vsel %vm460_vm0, %v1325_v57, 0.0 }
 0x82a   : > { %1332 = vadd.xlane.f32.xlu1 %v1331_v58 }
 0x894   : > { %v1330_v59 = vpop.xlane.xlu1 %1329 }
 0x895   : > { %v1334_v12 = vmul.f32 %v1330_v59, %v2025_v60 }
 0x897   : > { %v1336_v61 = vsub.f32 %v1324_v53, %v1334_v12 }
 0x899   : > { %v1338_v62 = vmul.f32 %v1336_v61, %v1336_v61 }
 0x89b   : > { %v1340_v63 = vsel %vm460_vm0, %v1338_v62, 0.0 }
 0x89c   : > { %1341 = vadd.xlane.f32.xlu0 %v1340_v63 }
 0x89d   : > { %v1333_v13 = vpop.xlane.xlu1 %1332 }
 0x89e   : > { %v1335_v0 = vmul.f32 %v1333_v13, %v2025_v60 }
 0x8a0   : > { %v1337_v1 = vsub.f32 %v1325_v57, %v1335_v0 }
 0x8a2   : > { %v1339_v2 = vmul.f32 %v1337_v1, %v1337_v1 }
 0x8a4   : > { %v1343_v3 = vsel %vm460_vm0, %v1339_v2, 0.0 }
 0x8a5   : > { %1344 = vadd.xlane.f32.xlu1 %v1343_v3 }
 0x90f   : > { %v1342_v4 = vpop.xlane.xlu0 %1341 }
 0x910   : > { %v1346_v5 = vmul.f32 %v1342_v4, %v2025_v60 }
 0x912   : > { %v1348_v6 = vadd.f32 1e-05, %v1346_v5 }
 0x914   : > { %1632 = vrsqrt.f32 %v1348_v6  ;;  %vm1356_vm13 = vweird.f32 %v1348_v6 }
 0x918   : > { %v1345_v7 = vpop.xlane.xlu1 %1344 }
 0x919   : > { %v1347_v18 = vmul.f32 %v1345_v7, %v2025_v60 }
 0x91a   : > { %v1633_v8 = vpop.eup %1632 }
 0x91b   : > { %v1351_v9 = vmul.f32 %v1633_v8, %v1348_v6  ;;  %v1349_v10 = vadd.f32 1e-05, %v1347_v18  ;;  %vm1357_vm12 = vweird.f32 %v1633_v8 }
 0x91c   : > { %vm1358_vm14 = vmor %vm1356_vm13, %vm1357_vm12 }
 0x91d   : > { %v1352_v11 = vmul.f32 %v1633_v8, %v1351_v9  ;;  %1634 = vrsqrt.f32 %v1349_v10  ;;  %vm1366_vm1 = vweird.f32 %v1349_v10 }
 0x91f   : > { %v1353_v31 = vmul.f32 0.5, %v1352_v11 }
 0x921   : > { %v1354_v14 = vsub.f32 1.5, %v1353_v31 }
 0x923   : > { %v1635_v15 = vpop.eup %1634  ;;  %v1355_v17 = vmul.f32 %v1633_v8, %v1354_v14 }
 0x924   : > { %v1361_v60 = vmul.f32 %v1635_v15, %v1349_v10  ;;  %vm1367_vm15 = vweird.f32 %v1635_v15 }
 0x925   : > { %v1359_v20 = vsel %vm1358_vm14, %v1633_v8, %v1355_v17  ;;  %vm1368_vm2 = vmor %vm1366_vm1, %vm1367_vm15 }
 0x926   : > { %v1370_v22 = vmul.f32 %v1359_v20, %v1336_v61  ;;  %v1362_v23 = vmul.f32 %v1635_v15, %v1361_v60 }
 0x928   : > { %v1375_v24 = vmul.f32 %v1592_v19, %v1370_v22  ;;  %v1363_v25 = vmul.f32 0.5, %v1362_v23 }
 0x92a   : > { %v1380_v26 = vadd.f32 %v1593_v21, %v1375_v24  ;;  %v1364_v27 = vsub.f32 1.5, %v1363_v25 }
 0x92c   : > { %v1365_v28 = vmul.f32 %v1635_v15, %v1364_v27  ;;  %1382 = vst.msk [vmem:[%s434_s30] sm:$0xff] %vm460_vm0, %v1380_v26 }
 0x92e   : > { %v1369_v29 = vsel %vm1368_vm2, %v1635_v15, %v1365_v28 }
 0x92f   : > { %v1371_v30 = vmul.f32 %v1369_v29, %v1337_v1 }
 0x931   : > { %v1376_v32 = vmul.f32 %v1592_v19, %v1371_v30 }
 0x933   : > { %v1381_v33 = vadd.f32 %v1593_v21, %v1376_v32 }
 0x935   : > { %1383 = vst.msk [vmem:[%s434_s30 + $0x8] sm:$0xff] %vm460_vm0, %v1381_v33 }
 0x936   : > { %1663 = shalt.err (!%p1660_p3)
}
 0x937   : > { %s1715_s17 = smov 128   ;;  %s2157_s30 = smov 8  }
 0x938   : > { %1531 = dma.vmem_to_hbm [thread:$0]  (%p1824_p5), %s1398_s20, 256, %s1400_s22, %s1385_s29, %s1715_s17, %s1715_s17, %s2157_s30  }
 0x939 PF: > { %p1537_p4 = scmp.ge.s32.totalorder %s1698_s28, 2  ;;  %s1414_s24 = sand.u32 1, %s1686_s25  }
 0x93a   : > { %s1415_s14 = scalar_lea.sflag [#allocation4], %s1414_s24 }
 0x93b   : > { %p1534_p7 = pnand %p1537_p4, %p1828_p6 }
 0x93d   : > { %p1535_p8 = pneg %p1534_p7 }
 0x93f   : > { %1681 = dma.done.wait (%p1535_p8), %s1415_s14, 256  }
 0x940   : > { %1683 = vsyncadd (%p1535_p8), %s1415_s14, 4294967040  ;;  %s2158_s28 = sld [smem:[#allocation7_spill]]  ;;  %s2161_s25 = smov %s1690_s26 }
 0x941   : > { %s2159_s27 = sld [smem:[#allocation6_spill]] }
 0x942   : > { %s2160_s23 = sld [smem:[#allocation8_spill]] }
 0x946   : > { %p23_p9 = scmp.ge.s32.totalorder %s2158_s28, 4  }
 0x947   : > { %s2162_s26 = smov %s2159_s27 }
 0x948   : > { %s2163_s27 = smov %s2160_s23  ;;  %25 = sbr.rel (!%p23_p9) target bundleno = 3 (0x3), region = 107 }
 0x94d   :  { %1421 = vsyncpa [#allocation4], 1 }
 0x94e   :  { %1423 = vsyncpa [#allocation4 + $0x1], 1 }

</bundles_post_ra>
